<compile_context>
chip_gen: v7x
topology: tpu7x:2x2x1
jax: 0.10.0
libtpu: 0.0.40
codegen_flags: <defaults>
</compile_context>

<pallas_src>
import functools
import math

import jax
import jax.numpy as jnp
from jax import lax
from jax.experimental import pallas as pl
from jax.experimental.pallas import tpu as pltpu


# --------------------------------------------------------------------------
# Kernels
# --------------------------------------------------------------------------
def _norm_rows_kernel(x_ref, scale_ref, shift_ref, o_ref, *, eps, inv_n):
    """One (batch, channel) instance per row; reduce over the lane axis."""
    xf = x_ref[...].astype(jnp.float32)                          # (TR, N) f32
    mean = jnp.sum(xf, axis=-1, keepdims=True) * inv_n           # (TR, 1)
    d = xf - mean
    var = jnp.sum(d * d, axis=-1, keepdims=True) * inv_n         # centered, 2-pass
    inv_std = lax.rsqrt(var + eps)
    # Fold normalize + affine into one per-element FMA: out = x * a + b.
    a = scale_ref[...] * inv_std                                  # (TR, 1)
    b = shift_ref[...] - mean * a
    o_ref[...] = (xf * a + b).astype(o_ref.dtype)


def _norm_packed_kernel(x_ref, scale_ref, shift_ref, o_ref, *, eps, n, g):
    """g instances packed per row (lane-dense path for small spatial n).

    x_ref: (TR, g*n); segment s of a row occupies lanes [s*n, (s+1)*n).
    Segment reductions / broadcasts use small MXU matmuls against a 0/1
    indicator so the output stays a dense multiple of 128 lanes.
    """
    xf = x_ref[...].astype(jnp.float32)                           # (TR, L)
    L = g * n
    hp = lax.Precision.HIGHEST
    j = lax.broadcasted_iota(jnp.int32, (L, g), 0) // n
    s = lax.broadcasted_iota(jnp.int32, (L, g), 1)
    red = (j == s).astype(jnp.float32)                            # (L, g) reduce
    jb = lax.broadcasted_iota(jnp.int32, (g, L), 1) // n
    sb = lax.broadcasted_iota(jnp.int32, (g, L), 0)
    bcast = (jb == sb).astype(jnp.float32)                        # (g, L) broadcast

    inv_n = 1.0 / n
    mean = jnp.dot(xf, red, preferred_element_type=jnp.float32,
                   precision=hp) * inv_n                          # (TR, g)
    d = xf - jnp.dot(mean, bcast, preferred_element_type=jnp.float32,
                     precision=hp)                                # (TR, L)
    var = jnp.dot(d * d, red, preferred_element_type=jnp.float32,
                  precision=hp) * inv_n                           # (TR, g)
    inv_std = lax.rsqrt(var + eps)
    a = scale_ref[...] * inv_std                                  # (TR, g)
    b = shift_ref[...] - mean * a
    a_b = jnp.dot(a, bcast, preferred_element_type=jnp.float32, precision=hp)
    b_b = jnp.dot(b, bcast, preferred_element_type=jnp.float32, precision=hp)
    o_ref[...] = (xf * a_b + b_b).astype(o_ref.dtype)


# --------------------------------------------------------------------------
# Tiling / VMEM planning
# --------------------------------------------------------------------------
def _round_down(x, m):
    return (x // m) * m


def _lcm(a, b):
    return a * b // math.gcd(a, b)


def _vmem_capacity_bytes():
    try:
        return int(pltpu.get_tpu_info().vmem_capacity_bytes)
    except Exception:
        return None


def _plan_tiles(rows, lanes, g, channels, itemsize, f32_temp_blocks):
    """Pick (row_tile, params_grid_invariant, vmem_limit_bytes)."""
    sub = 8 * max(1, 4 // itemsize)              # sublane quantum: 8 f32, 16 bf16
    c_req = channels // math.gcd(g, channels)    # tile multiple for channel alignment
    quantum = _lcm(sub, c_req)
    invariant = True
    if quantum > rows:
        quantum = sub
        invariant = False

    phys = _vmem_capacity_bytes()
    if phys is not None and phys <= 96 * 2**20:
        # v7x-class: 64 MiB VMEM but ~3.2 TB/s HBM -> bigger steps to amortize
        # the ~0.35 us per-step fixed cost.
        target_x_block_f32 = 8 * 2**20
    else:
        # v5e / v6e (128 MiB VMEM): ~4 MiB blocks already reach ~85% roofline.
        target_x_block_f32 = 4 * 2**20
    phys_eff = phys if phys is not None else 64 * 2**20    # conservative if unknown
    budget_total = min(int(phys_eff * 0.70), 96 * 2**20)

    # Footprint per tile row: double-buffered in+out blocks (native dtype),
    # live f32 working values, and the lane-padded (TR, g) param buffers.
    bytes_per_row = (2 * 2 * lanes * itemsize
                     + f32_temp_blocks * lanes * 4
                     + 4 * 128 * 4)
    # TODO(synk): if even `quantum * bytes_per_row` exceeds the VMEM budget
    # (huge spatial N), a two-pass N-split accumulation grid is required.
    tr = max(quantum,
             _round_down(min(target_x_block_f32 // max(1, lanes * 4),
                             budget_total // max(1, bytes_per_row)),
                         quantum))

    # Never collapse to a single grid step when rows allow >= 4 tiles
    # (software pipelining + 2 steps per TensorCore on dual-TC chips).
    desired_steps = 4
    max_steps = rows // quantum
    steps = min(desired_steps, max_steps)
    if steps >= 2:
        tr = min(tr, max(quantum, _round_down(rows // steps, quantum)))
    if tr >= rows:
        tr = rows
    invariant = invariant and (tr % c_req == 0)

    footprint = tr * bytes_per_row
    vmem_limit = max(footprint + 4 * 2**20, 32 * 2**20)
    vmem_limit = min(vmem_limit, int(phys_eff * 0.85))
    return tr, invariant, int(vmem_limit)


# --------------------------------------------------------------------------
# Wrapper
# --------------------------------------------------------------------------
def instance_norm(x, scale, shift, *, eps=1e-5):
    """Pallas InstanceNorm forward.  x: [B, C, *spatial]; scale, shift: [C]."""
    x_shape = x.shape
    b, c = int(x_shape[0]), int(x_shape[1])
    n = 1
    for d in x_shape[2:]:
        n *= int(d)
    n = max(n, 1)
    rows_orig = b * c

    # Lane-dense packing for small spatial sizes: put g (batch, channel)
    # instances side by side so the lane dim is a multiple of 128.
    g = 1
    if n < 128:
        g_cand = 128 // math.gcd(n, 128)
        if g_cand > 1 and rows_orig % g_cand == 0:
            g = g_cand
        # TODO(synk): rows not divisible by g (odd B*C with tiny spatial) falls
        # back to the lane-sparse layout instead of padding rows.

    rows = rows_orig // g
    lanes = g * n
    x2 = x.reshape(rows, lanes)                       # pure view (row-major)

    itemsize = jnp.dtype(x.dtype).itemsize
    f32_temp_blocks = 2 if g == 1 else 5              # live f32 row-blocks in-kernel
    tr, invariant, vmem_limit = _plan_tiles(rows, lanes, g, c, itemsize,
                                            f32_temp_blocks)
    grid = (pl.cdiv(rows, tr),)

    # Per-row-segment channel ids.  When the row tile is channel-aligned the
    # pattern repeats every `tr` rows, so one (tr, g) slab stays resident
    # (constant index_map -> fetched once, no per-step narrow DMAs).
    slab_rows = tr if invariant else rows
    ch = (jnp.arange(slab_rows * g, dtype=jnp.int32) % c).reshape(slab_rows, g)
    scale_slab = jnp.take(scale.astype(jnp.float32), ch, axis=0)
    shift_slab = jnp.take(shift.astype(jnp.float32), ch, axis=0)
    if invariant:
        param_map = lambda i: (0, 0)
    else:
        param_map = lambda i: (i, 0)

    if g == 1:
        kernel = functools.partial(_norm_rows_kernel, eps=float(eps),
                                   inv_n=1.0 / n)
    else:
        kernel = functools.partial(_norm_packed_kernel, eps=float(eps), n=n, g=g)

    out = pl.pallas_call(
        kernel,
        out_shape=jax.ShapeDtypeStruct((rows, lanes), x.dtype),
        grid_spec=pltpu.PrefetchScalarGridSpec(
            num_scalar_prefetch=0,
            grid=grid,
            in_specs=[
                pl.BlockSpec((tr, lanes), lambda i: (i, 0)),
                pl.BlockSpec((tr, g), param_map),
                pl.BlockSpec((tr, g), param_map),
            ],
            out_specs=pl.BlockSpec((tr, lanes), lambda i: (i, 0)),
        ),
        compiler_params=pltpu.CompilerParams(
            dimension_semantics=("parallel",),
            vmem_limit_bytes=vmem_limit,
        ),
    )(x2, scale_slab, shift_slab)
    return out.reshape(x_shape)


# --------------------------------------------------------------------------
# Reference & tests
# --------------------------------------------------------------------------
def _reference(x, scale, shift, eps=1e-5):
    shp = x.shape
    b, c = shp[0], shp[1]
    xf = x.reshape(b, c, -1).astype(jnp.float32)
    mean = jnp.mean(xf, axis=-1, keepdims=True)
    var = jnp.mean((xf - mean) ** 2, axis=-1, keepdims=True)
    xn = (xf - mean) / jnp.sqrt(var + eps)
    out = (scale.astype(jnp.float32).reshape(1, -1, 1) * xn
           + shift.astype(jnp.float32).reshape(1, -1, 1))
    return out.reshape(shp)          # f32 reference


if __name__ == "__main__":
    key = jax.random.PRNGKey(0)
    k1, k2, k3, k4 = jax.random.split(key, 4)

    # 1) Base shape from the module docstring: [batch, channels, H, W].
    B, C, H, W = 2, 4, 16, 16
    x = jax.random.normal(k1, (B, C, H, W), dtype=jnp.float32)
    scale = jnp.ones((C,), dtype=jnp.float32)      # nn.Parameter(torch.ones(C))
    shift = jnp.zeros((C,), dtype=jnp.float32)     # nn.Parameter(torch.zeros(C))
    y = jax.block_until_ready(instance_norm(x, scale, shift, eps=1e-5))
    assert y.shape == x.shape and y.dtype == x.dtype
    assert jnp.allclose(y.astype(jnp.float32), _reference(x, scale, shift),
                        atol=1e-5, rtol=1e-5)

    # 2) Multi-step row-tiled grid + grid-invariant affine params (+ offset to
    #    exercise the centered-variance path).
    B2, C2, H2, W2 = 8, 16, 32, 32
    x2 = jax.random.normal(k2, (B2, C2, H2, W2), dtype=jnp.float32) * 3.0 + 10.0
    sc2 = jnp.linspace(0.5, 1.5, C2, dtype=jnp.float32)
    sh2 = jnp.linspace(-0.5, 0.5, C2, dtype=jnp.float32)
    y2 = jax.block_until_ready(instance_norm(x2, sc2, sh2))
    assert jnp.allclose(y2, _reference(x2, sc2, sh2), atol=1e-3, rtol=1e-3)

    # 3) Lane-dense packed path for small spatial sizes (N = 64 < 128).
    B3, C3, H3, W3 = 4, 8, 8, 8
    x3 = jax.random.normal(k3, (B3, C3, H3, W3), dtype=jnp.float32) * 2.0 - 1.0
    sc3 = jnp.linspace(0.8, 1.2, C3, dtype=jnp.float32)
    sh3 = jnp.linspace(-0.2, 0.2, C3, dtype=jnp.float32)
    y3 = jax.block_until_ready(instance_norm(x3, sc3, sh3))
    assert jnp.allclose(y3, _reference(x3, sc3, sh3), atol=2e-2, rtol=2e-2)

    # 4) bf16 input exercises the itemsize-aware sublane / VMEM accounting.
    xb = jax.random.normal(k4, (4, 8, 32, 32), dtype=jnp.float32).astype(jnp.bfloat16)
    scb = jnp.ones((8,), dtype=jnp.float32)
    shb = jnp.zeros((8,), dtype=jnp.float32)
    yb = jax.block_until_ready(instance_norm(xb, scb, shb))
    assert yb.dtype == jnp.bfloat16
    assert jnp.allclose(yb.astype(jnp.float32), _reference(xb, scb, shb),
                        atol=5e-2, rtol=5e-2)

    print("KERNEL_OK")
</pallas_src>

<mosaic_0001>
module attributes {stable_mosaic.version = 11 : i64} {
  func.func @_norm_rows_kernel(%arg0: i32, %arg1: memref<8x256xf32, #tpu.memory_space<vmem>>, %arg2: memref<8x1xf32, #tpu.memory_space<vmem>>, %arg3: memref<8x1xf32, #tpu.memory_space<vmem>>, %arg4: memref<8x256xf32, #tpu.memory_space<vmem>>) attributes {dimension_semantics = [#tpu.dimension_semantics<parallel>], iteration_bounds = array<i64: 1>, scalar_prefetch = 0 : i64, scratch_operands = 0 : i64, tpu.core_type = #tpu.core_type<tc>, window_params = [{transform_indices = @transform_0, window_bounds = array<i64: 8, 256>}, {pipeline_mode = #tpu.pipeline_mode<synchronous>, transform_indices = @transform_1, window_bounds = array<i64: 8, 1>}, {pipeline_mode = #tpu.pipeline_mode<synchronous>, transform_indices = @transform_2, window_bounds = array<i64: 8, 1>}, {transform_indices = @transform_3, window_bounds = array<i64: 8, 256>}]} {
    %c0 = arith.constant 0 : index
    %c0_0 = arith.constant 0 : index
    %0 = vector.load %arg1[%c0, %c0_0] : memref<8x256xf32, #tpu.memory_space<vmem>>, vector<8x256xf32>
    %cst = arith.constant dense<0.000000e+00> : vector<8xf32>
    %1 = vector.multi_reduction <add>, %0, %cst [1] : vector<8x256xf32> to vector<8xf32>
    %2 = vector.shape_cast %1 : vector<8xf32> to vector<8x1xf32>
    %cst_1 = arith.constant 3.906250e-03 : f32
    %3 = vector.broadcast %cst_1 : f32 to vector<8x1xf32>
    %4 = arith.mulf %2, %3 : vector<8x1xf32>
    %5 = vector.broadcast %4 : vector<8x1xf32> to vector<8x256xf32>
    %6 = arith.subf %0, %5 : vector<8x256xf32>
    %7 = arith.mulf %6, %6 : vector<8x256xf32>
    %cst_2 = arith.constant dense<0.000000e+00> : vector<8xf32>
    %8 = vector.multi_reduction <add>, %7, %cst_2 [1] : vector<8x256xf32> to vector<8xf32>
    %9 = vector.shape_cast %8 : vector<8xf32> to vector<8x1xf32>
    %cst_3 = arith.constant 3.906250e-03 : f32
    %10 = vector.broadcast %cst_3 : f32 to vector<8x1xf32>
    %11 = arith.mulf %9, %10 : vector<8x1xf32>
    %cst_4 = arith.constant 9.99999974E-6 : f32
    %12 = vector.broadcast %cst_4 : f32 to vector<8x1xf32>
    %13 = arith.addf %11, %12 : vector<8x1xf32>
    %14 = math.rsqrt %13 : vector<8x1xf32>
    %c0_5 = arith.constant 0 : index
    %c0_6 = arith.constant 0 : index
    %15 = vector.load %arg2[%c0_5, %c0_6] : memref<8x1xf32, #tpu.memory_space<vmem>>, vector<8x1xf32>
    %16 = arith.mulf %15, %14 : vector<8x1xf32>
    %c0_7 = arith.constant 0 : index
    %c0_8 = arith.constant 0 : index
    %17 = vector.load %arg3[%c0_7, %c0_8] : memref<8x1xf32, #tpu.memory_space<vmem>>, vector<8x1xf32>
    %18 = arith.mulf %4, %16 : vector<8x1xf32>
    %19 = arith.subf %17, %18 : vector<8x1xf32>
    %20 = vector.broadcast %16 : vector<8x1xf32> to vector<8x256xf32>
    %21 = arith.mulf %0, %20 : vector<8x256xf32>
    %22 = vector.broadcast %19 : vector<8x1xf32> to vector<8x256xf32>
    %23 = arith.addf %21, %22 : vector<8x256xf32>
    %c0_9 = arith.constant 0 : index
    %c0_10 = arith.constant 0 : index
    %24 = vector.load %arg4[%c0_9, %c0_10] : memref<8x256xf32, #tpu.memory_space<vmem>>, vector<8x256xf32>
    tpu.vector_store %arg4[%c0_9, %c0_10], %23 {strides = array<i32>} : memref<8x256xf32, #tpu.memory_space<vmem>>, vector<8x256xf32>,
    return
  }
  func.func @transform_0(%arg0: i32) -> (i32, i32) {
    %c0_i32 = arith.constant 0 : i32
    %c0_i32_0 = arith.constant 0 : i32
    return %arg0, %c0_i32 : i32, i32
  }
  func.func @transform_1(%arg0: i32) -> (i32, i32) {
    %c0_i32 = arith.constant 0 : i32
    %c0_i32_0 = arith.constant 0 : i32
    %c0_i32_1 = arith.constant 0 : i32
    return %c0_i32, %c0_i32_0 : i32, i32
  }
  func.func @transform_2(%arg0: i32) -> (i32, i32) {
    %c0_i32 = arith.constant 0 : i32
    %c0_i32_0 = arith.constant 0 : i32
    %c0_i32_1 = arith.constant 0 : i32
    return %c0_i32, %c0_i32_0 : i32, i32
  }
  func.func @transform_3(%arg0: i32) -> (i32, i32) {
    %c0_i32 = arith.constant 0 : i32
    %c0_i32_0 = arith.constant 0 : i32
    return %arg0, %c0_i32 : i32, i32
  }
}

</mosaic_0001>

<bundles_post_ra>
// kernel: tpu_custom_call.1
= control target key start
LH: loop header
LB: loop body
LE: loop exit
PB: predicated region body
PF: predicated region fallthrough
CT: control target
= control target key end

     0   :  { %s142_s0 = inlined_call_operand.vmem [shape: f32[8,256], index: 0, kind: input, shape index: {}]   ;;  %s143_s1 = inlined_call_operand.vmem [shape: f32[8,1], index: 1, kind: input, shape index: {}]   ;;  %s144_s2 = inlined_call_operand.vmem [shape: f32[8,1], index: 2, kind: input, shape index: {}]   ;;  %s145_s3 = inlined_call_operand.hbm [shape: f32[8,256], index: 3, kind: output, shape index: {}]  }
   0x1   :  { %v15_v0 = vld [vmem:[%s142_s0] sm:$0xff]  ;;  %v16_v1 = vld [vmem:[%s142_s0 + $0x8] sm:$0xff] }
   0x2   :  { %8 = vsyncpa [#allocation3], 0  ;;  %v17_v2 = vadd.f32 %v16_v1, %v15_v0  ;;  %v96_v10 = vmov 0   ;;  %v31_v14 = vld [vmem:[%s143_s1] sm:$0xff]  ;;  %s97_s19 = smov [#allocation2]  }
   0x3   :  { %68 = vset.pattern.permute.xlu1 %v96_v10  ;;  %69 = vset.pattern.permute.xlu0 %v96_v10  ;;  %v33_v17 = vld [vmem:[%s144_s2] sm:$0xff]  ;;  %s58_s20 = sshll.u32 %s97_s19, 4  ;;  %s59_s20 = int_to_ptr.vmem [resolvable:$true] %s58_s20 }
   0x4   :  { %18 = vadd.xlane.f32.xlu0 %v17_v2  ;;  %s72_s1 = scalar_lea.vmem %s59_s20, 256  ;;  %p77_p1 = scmp.lt.s32.totalorder %s59_s20, %s59_s20 }
   0x5   :  { %p73_p0 = scmp.ne.s32.totalorder %s59_s20, %s72_s1  ;;  %p78_p2 = scmp.lt.s32.totalorder %s72_s1, %s72_s1 }
   0x7   :  { %p79_p3 = por %p78_p2, %p77_p1 }
   0x9   :  { %p80_p4 = pnand %p79_p3, %p73_p0 }
  0x91   :  { %v19_v3 = vpop.xlane.xlu0 %18 }
  0x92   :  { %v20_v4 = vmul.f32 0.00390625, %v19_v3 }
  0x94   :  { %v21_v5 = vsub.f32 %v15_v0, %v20_v4  ;;  %v22_v6 = vsub.f32 %v16_v1, %v20_v4 }
  0x96   :  { %v23_v7 = vmul.f32 %v21_v5, %v21_v5  ;;  %v24_v8 = vmul.f32 %v22_v6, %v22_v6 }
  0x98   :  { %v25_v9 = vadd.f32 %v24_v8, %v23_v7 }
  0x9a   :  { %26 = vadd.xlane.f32.xlu0 %v25_v9 }
 0x127   :  { %v27_v11 = vpop.xlane.xlu0 %26 }
 0x128   :  { %v28_v12 = vmul.f32 0.00390625, %v27_v11 }
 0x12a   :  { %v29_v13 = vadd.f32 1e-05, %v28_v12 }
 0x12c   :  { %70 = vrsqrt.f32 %v29_v13 }
 0x136   :  { %v71_v15 = vpop.eup %70 }
 0x137   :  { %v32_v16 = vmul.f32 %v71_v15, %v31_v14 }
 0x139   :  { %38 = vperm.xlu1 %68, %v32_v16   ;;  %v34_v18 = vmul.f32 %v32_v16, %v20_v4 }
 0x13b   :  { %v35_v19 = vsub.f32 %v33_v17, %v34_v18 }
 0x13d   :  { %45 = vperm.xlu1 %68, %v35_v19  }
 0x1b8   :  { %v39_v20 = vpop.permute.xlu1 %38 }
 0x1b9   :  { %v41_v21 = vmul.f32 %v39_v20, %v15_v0  ;;  %v42_v22 = vmul.f32 %v39_v20, %v16_v1 }
 0x1bc   :  { %v46_v23 = vpop.permute.xlu1 %45 }
 0x1bd   :  { %v48_v24 = vadd.f32 %v46_v23, %v41_v21  ;;  %v49_v25 = vadd.f32 %v46_v23, %v42_v22 }
 0x1bf   :  { %50 = vst [vmem:[#allocation2] sm:$0xff] %v48_v24  ;;  %51 = vst [vmem:[#allocation2 + $0x8] sm:$0xff] %v49_v25 }
 0x1c0   :  { %83 = shalt.err (!%p80_p4)
}
 0x1c1   :  { %s84_s22 = scalar_lea.hbm %s145_s3, 256 }
 0x1c2   :  { %p85_p5 = scmp.ne.s32.totalorder %s145_s3, %s84_s22  ;;  %p88_p6 = scmp.lt.u32.totalorder %s84_s22, %s145_s3 }
 0x1c4   :  { %p90_p7 = pnand %p88_p6, %p85_p5 }
 0x1c6   :  { %93 = shalt.err (!%p90_p7)
}
 0x1c7   :  { %61 = dma.vmem_to_hbm [thread:$0]  %s59_s20, 256, %s145_s3, [#allocation3]  }
 0x1c8   :  { %94 = dma.done.wait [#allocation3], 256  }
 0x1c9   :  { %95 = vsyncadd [#allocation3], 4294967040 }
 0x1ca   :  { %65 = vsyncpa [#allocation3], 1 }

</bundles_post_ra>
